<compile_context>
chip_gen: v6e
topology: v6e:2x2x1
jax: 0.10.0
libtpu: 0.0.40
codegen_flags: <defaults>
</compile_context>

<pallas_src>
import jax
import jax.numpy as jnp
from jax.experimental import pallas as pl
from jax.experimental.pallas import tpu as pltpu

# ---- configuration (small, synthetic) ---------------------------------------
POOL = 7                 # POOLER_RESOLUTION
SPATIAL_SCALE = 0.25     # POOLER_SCALES (single level)
SAMPLING_RATIO = 2       # POOLER_SAMPLING_RATIO
REP_SIZE = 32            # MLP_HEAD_DIM (representation_size)
NUM_CLASSES = 7          # 6 foreground classes + background

REP_PAD = 128            # fc6/fc7 width padded to one full lane tile
HEAD_PAD = 128           # concat(cls=7, bbox=28) = 35 -> padded to 128 lanes
PQ_PAD = 64              # POOL*POOL = 49 padded to 64 -> K = C*PQ_PAD is 128-aligned


def _round_up(x, m):
    return ((x + m - 1) // m) * m


def _pow2_floor(x):
    return 1 << (max(int(x), 1).bit_length() - 1)


# ---- Pallas kernel 1: ROIAlign pooling as batched interpolation matmuls ------
def _roialign_pool_kernel(sel_ref, feat_ref, bop_ref, x3_ref):
    # sel_ref : (G, B)          bf16 one-hot of batch_idx
    # feat_ref: (B, C, H*W)     bf16, whole feature map resident in VMEM (constant block)
    # bop_ref : (G, PQ_PAD, HW) bf16 per-ROI interpolation operator
    # x3_ref  : (G, C, PQ_PAD)  bf16 pooled output
    sel = sel_ref[...]
    g = sel.shape[0]
    n_img, c, hw = feat_ref.shape
    # Gather each ROI's image features as a one-hot weighted sum (exact: weights are 0/1).
    fsel = jnp.zeros((g, c, hw), dtype=feat_ref.dtype)
    for b in range(n_img):
        w = sel[:, b:b + 1][:, :, None]                        # (G,1,1)
        fsel = fsel + w * feat_ref[b][None, :, :]              # (G,C,HW)
    # pooled[r, c, j] = sum_m fsel[r, c, m] * Bop[r, j, m]  (batched MXU matmul, f32 acc)
    pooled = jnp.einsum('rcm,rjm->rcj', fsel, bop_ref[...],
                        preferred_element_type=jnp.float32)    # (G, C, PQ_PAD)
    x3_ref[...] = pooled.astype(x3_ref.dtype)                  # bf16 store


def roialign_pool(sel, feats_flat, bop, *, blk):
    n_pad, n_img = sel.shape
    _, c, hw = feats_flat.shape
    pq = bop.shape[1]
    assert n_pad % blk == 0
    return pl.pallas_call(
        _roialign_pool_kernel,
        grid_spec=pltpu.PrefetchScalarGridSpec(
            num_scalar_prefetch=0,
            grid=(n_pad // blk,),
            in_specs=[pl.BlockSpec((blk, n_img), lambda i: (i, 0)),
                      pl.BlockSpec((n_img, c, hw), lambda i: (0, 0, 0)),
                      pl.BlockSpec((blk, pq, hw), lambda i: (i, 0, 0))],
            out_specs=pl.BlockSpec((blk, c, pq), lambda i: (i, 0, 0)),
        ),
        out_shape=jax.ShapeDtypeStruct((n_pad, c, pq), jnp.bfloat16),
        compiler_params=pltpu.CompilerParams(
            dimension_semantics=("parallel",),
            vmem_limit_bytes=32 * 1024 * 1024),
    )(sel, feats_flat, bop)


# ---- Pallas kernel 2: fused 2-MLP feature extractor + fused predictor head ---
def _fused_box_head_kernel(x_ref, w6_ref, b6_ref, w7_ref, b7_ref, wh_ref, bh_ref,
                           xc_ref, head_ref):
    x = x_ref[...]                                                   # (tm, K_pad) bf16
    h6 = jnp.dot(x, w6_ref[...], preferred_element_type=jnp.float32)
    h6 = jnp.maximum(h6 + b6_ref[...], 0.0)                          # ReLU(fc6), f32
    h7 = jnp.dot(h6.astype(w7_ref.dtype), w7_ref[...],
                 preferred_element_type=jnp.float32)
    h7 = jnp.maximum(h7 + b7_ref[...], 0.0)                          # ReLU(fc7), f32
    xc_ref[...] = h7.astype(xc_ref.dtype)                            # bf16 lane-dense store
    head_ref[...] = jnp.dot(h7.astype(wh_ref.dtype), wh_ref[...],    # fused cls+bbox head
                            preferred_element_type=jnp.float32) + bh_ref[...]


def fused_box_head(x_flat, padded_params, *, tm):
    """x_flat: (n_pad, K_pad) bf16. Returns (xc_pad bf16, head_pad f32), both (n_pad, 128)."""
    w6, b6, w7, b7, wh, bh = padded_params
    n_pad, k = x_flat.shape
    assert n_pad % tm == 0

    row_in = pl.BlockSpec((tm, k), lambda i: (i, 0))
    row_out = lambda cols: pl.BlockSpec((tm, cols), lambda i: (i, 0))
    full = lambda arr: pl.BlockSpec(arr.shape, lambda i: (0, 0))

    xc_pad, head_pad = pl.pallas_call(
        _fused_box_head_kernel,
        grid_spec=pltpu.PrefetchScalarGridSpec(
            num_scalar_prefetch=0,
            grid=(n_pad // tm,),
            in_specs=[row_in,
                      full(w6), full(b6),
                      full(w7), full(b7),
                      full(wh), full(bh)],
            out_specs=[row_out(REP_PAD), row_out(HEAD_PAD)],
        ),
        out_shape=(jax.ShapeDtypeStruct((n_pad, REP_PAD), jnp.bfloat16),
                   jax.ShapeDtypeStruct((n_pad, HEAD_PAD), jnp.float32)),
        compiler_params=pltpu.CompilerParams(
            dimension_semantics=("parallel",),
            vmem_limit_bytes=32 * 1024 * 1024),
    )(x_flat, w6, b6, w7, b7, wh, bh)
    return xc_pad, head_pad


# ---- host-side (XLA, tiny) ROIAlign operator construction --------------------
def _interp_matrix(coord0, extent, n_bins, size):
    """Per-ROI 1-D bilinear averaging matrix A: (R, n_bins, size)."""
    sr = SAMPLING_RATIO
    bin_sz = extent / n_bins                                        # (R,)
    sub = (jnp.arange(sr, dtype=jnp.float32) + 0.5) / sr            # (sr,)
    bins = jnp.arange(n_bins, dtype=jnp.float32)                    # (P,)
    s = coord0[:, None, None] + (bins[None, :, None] + sub[None, None, :]) * bin_sz[:, None, None]
    s = jnp.clip(s, 0.0, size - 1.0)                                # (R, P, sr)
    # TODO(synk): reference ROIAlign zeroes samples outside [-1, size] before clamping;
    # boxes partially outside the feature map differ slightly here.
    s0 = jnp.floor(s)
    s1 = jnp.minimum(s0 + 1.0, size - 1.0)
    frac = s - s0
    grid = jnp.arange(size, dtype=jnp.float32)                      # (size,)
    w_lo = (grid == s0[..., None]).astype(jnp.float32) * (1.0 - frac)[..., None]
    w_hi = (grid == s1[..., None]).astype(jnp.float32) * frac[..., None]
    return (w_lo + w_hi).mean(axis=2)                               # (R, P, size)


# ---- parameter init (deterministic, synthetic) + padding/fusion prep ---------
def init_params(key, in_features, rep, num_classes):
    ks = jax.random.split(key, 4)

    def lin(k, fin, fout, std):
        w = jax.random.normal(k, (fin, fout), jnp.float32) * std
        b = jnp.zeros((fout,), jnp.float32)
        return w, b

    w6, b6 = lin(ks[0], in_features, rep, 0.01)        # fc6
    w7, b7 = lin(ks[1], rep, rep, 0.01)                # fc7
    wc, bc = lin(ks[2], rep, num_classes, 0.01)        # cls_score
    wb, bb = lin(ks[3], rep, num_classes * 4, 0.001)   # bbox_pred
    return (w6, b6, w7, b7, wc, bc, wb, bb)


def pad_params(params, compute_dtype=jnp.bfloat16):
    """Pad every matmul N dim to 128 lanes, fuse cls/bbox heads into one weight, and
    permute/pad fc6 rows to the (channel, padded-(p,q)) layout the Pallas pooler emits.
    Matmul weights cast to bf16; biases stay f32 (added post-accumulation)."""
    w6, b6, w7, b7, wc, bc, wb, bb = params
    k, rep = w6.shape
    c = k // (POOL * POOL)

    w6r = w6.reshape(c, POOL * POOL, rep)
    w6r = jnp.pad(w6r, ((0, 0), (0, PQ_PAD - POOL * POOL), (0, REP_PAD - rep)))
    w6p = w6r.reshape(c * PQ_PAD, REP_PAD).astype(compute_dtype)   # (C*PQ_PAD, 128)

    def padw(w, rows, cols):
        return jnp.pad(w, ((0, rows - w.shape[0]), (0, cols - w.shape[1]))).astype(compute_dtype)

    def padb(b, cols):
        return jnp.pad(b, (0, cols - b.shape[0])).reshape(1, cols).astype(jnp.float32)

    wh = jnp.concatenate([wc, wb], axis=1)             # (rep, 35): fused head weight
    bh = jnp.concatenate([bc, bb], axis=0)             # (35,)
    return (w6p, padb(b6, REP_PAD),
            padw(w7, REP_PAD, REP_PAD), padb(b7, REP_PAD),
            padw(wh, REP_PAD, HEAD_PAD), padb(bh, HEAD_PAD))


# ---- ROIBoxHead.forward (inference path) -------------------------------------
def roi_box_head_forward(features, boxes, batch_idx, padded_params,
                         *, rep=REP_SIZE, num_classes=NUM_CLASSES,
                         compute_dtype=jnp.bfloat16):
    B, C, H, W = features.shape
    n = boxes.shape[0]

    # Row blocking: always >=2 grid blocks (both v7x TensorCores busy); MLP tile grows
    # up to 512 rows for large R (amortizes ~0.35us/step on v6e); pooler tile capped at
    # 64 rows so its per-block Bop tile stays ~2 MB bf16 in VMEM.
    n_pad0 = _round_up(max(n, 16), 16)
    blk_mlp = min(512, _pow2_floor(n_pad0 // 2))
    blk_pool = min(64, blk_mlp)
    n_pad = _round_up(n_pad0, blk_mlp)

    if n_pad != n:
        # Pad the tiny per-ROI metadata only; pooled activations come out at n_pad rows.
        pad = n_pad - n
        dummy_box = jnp.tile(jnp.array([[0.0, 0.0, 4.0, 4.0]], jnp.float32), (pad, 1))
        boxes = jnp.concatenate([boxes, dummy_box], axis=0)
        batch_idx = jnp.concatenate(
            [batch_idx, jnp.zeros((pad,), batch_idx.dtype)], axis=0)

    # Host-side (XLA) prep — all tiny, O(R * P * (H + W)) / O(R * P^2 * H * W) operators.
    x1 = boxes[:, 0] * SPATIAL_SCALE
    y1 = boxes[:, 1] * SPATIAL_SCALE
    x2 = boxes[:, 2] * SPATIAL_SCALE
    y2 = boxes[:, 3] * SPATIAL_SCALE
    roi_w = jnp.maximum(x2 - x1, 1.0)
    roi_h = jnp.maximum(y2 - y1, 1.0)
    Ay = _interp_matrix(y1, roi_h, POOL, H)                        # (n_pad, P, H)
    Ax = _interp_matrix(x1, roi_w, POOL, W)                        # (n_pad, P, W)
    bop = jnp.einsum('rph,rqw->rpqhw', Ay, Ax).reshape(n_pad, POOL * POOL, H * W)
    bop = jnp.pad(bop, ((0, 0), (0, PQ_PAD - POOL * POOL), (0, 0))).astype(compute_dtype)
    sel = (batch_idx[:, None] ==
           jnp.arange(B, dtype=batch_idx.dtype)[None, :]).astype(compute_dtype)  # (n_pad, B)
    feats_flat = features.reshape(B, C, H * W).astype(compute_dtype)             # (B, C, HW)

    # Kernel 1: ROIAlign pooling in Pallas (no slab gather, no f32 round-trip, bf16 out).
    x3 = roialign_pool(sel, feats_flat, bop, blk=blk_pool)         # (n_pad, C, PQ_PAD) bf16
    x_flat = x3.reshape(n_pad, C * PQ_PAD)                         # free row-major reshape

    # Kernel 2: fc6 -> ReLU -> fc7 -> ReLU -> fused cls+bbox head.
    xc_pad, head_pad = fused_box_head(x_flat, padded_params, tm=blk_mlp)

    xc = xc_pad[:n, :rep].astype(jnp.float32)
    class_logits = head_pad[:n, :num_classes]
    box_regression = head_pad[:n, num_classes:num_classes * 5]
    # TODO(synk): post_processor (box decode + per-class NMS) is data-dependent control
    # flow with no clean Pallas equivalent; returning raw head outputs.
    # TODO(synk): training branch (loss_evaluator.subsample + losses) not implemented.
    # TODO(synk): at real Mask R-CNN sizes (C=256, large H*W) switch kernel 1 to a
    # scalar-prefetched batch_idx index_map (per-ROI feature DMA) instead of keeping the
    # whole feature map VMEM-resident, and add a K-reduction grid axis to kernel 2.
    result = (class_logits, box_regression)
    return xc, result, {}


if __name__ == "__main__":
    key = jax.random.PRNGKey(0)
    k_feat, k_box, k_par = jax.random.split(key, 3)

    B, C, Hs, Ws = 2, 4, 16, 16
    features = jax.random.normal(k_feat, (B, C, Hs, Ws), jnp.float32)

    # proposals: 8 boxes per image, in image coords (image ~64x64 since scale=0.25)
    R_PER = 8
    kx1, ky1, kw, kh = jax.random.split(k_box, 4)
    x1 = jax.random.uniform(kx1, (B * R_PER,), minval=0.0, maxval=40.0)
    y1 = jax.random.uniform(ky1, (B * R_PER,), minval=0.0, maxval=40.0)
    bw = jax.random.uniform(kw, (B * R_PER,), minval=4.0, maxval=20.0)
    bh = jax.random.uniform(kh, (B * R_PER,), minval=4.0, maxval=20.0)
    boxes = jnp.stack(
        [x1, y1, jnp.minimum(x1 + bw, 63.0), jnp.minimum(y1 + bh, 63.0)], axis=1)
    batch_idx = jnp.repeat(jnp.arange(B), R_PER)

    params = init_params(k_par, C * POOL * POOL, REP_SIZE, NUM_CLASSES)
    padded_params = pad_params(params)

    fwd = jax.jit(roi_box_head_forward)
    xc, (class_logits, box_regression), losses = fwd(
        features, boxes, batch_idx, padded_params)
    jax.block_until_ready((xc, class_logits, box_regression))

    assert xc.shape == (B * R_PER, REP_SIZE)
    assert class_logits.shape == (B * R_PER, NUM_CLASSES)
    assert box_regression.shape == (B * R_PER, NUM_CLASSES * 4)
    print("KERNEL_OK")
</pallas_src>

<mosaic_0001>
module attributes {stable_mosaic.version = 11 : i64} {
  func.func @_roialign_pool_kernel(%arg0: i32, %arg1: memref<8x2xbf16, #tpu.memory_space<vmem>>, %arg2: memref<2x4x256xbf16, #tpu.memory_space<vmem>>, %arg3: memref<8x64x256xbf16, #tpu.memory_space<vmem>>, %arg4: memref<8x4x64xbf16, #tpu.memory_space<vmem>>) attributes {dimension_semantics = [#tpu.dimension_semantics<parallel>], iteration_bounds = array<i64: 2>, scalar_prefetch = 0 : i64, scratch_operands = 0 : i64, tpu.core_type = #tpu.core_type<tc>, window_params = [{transform_indices = @transform_0, window_bounds = array<i64: 8, 2>}, {pipeline_mode = #tpu.pipeline_mode<synchronous>, transform_indices = @transform_1, window_bounds = array<i64: 2, 4, 256>}, {transform_indices = @transform_2, window_bounds = array<i64: 8, 64, 256>}, {transform_indices = @transform_3, window_bounds = array<i64: 8, 4, 64>}]} {
    %c0 = arith.constant 0 : index
    %c0_0 = arith.constant 0 : index
    %0 = vector.load %arg1[%c0, %c0_0] : memref<8x2xbf16, #tpu.memory_space<vmem>>, vector<8x2xbf16>
    %cst = arith.constant 0.000000e+00 : bf16
    %1 = vector.broadcast %cst : bf16 to vector<8x4x256xbf16>
    %2 = vector.extract_strided_slice %0 {offsets = [0, 0], sizes = [8, 1], strides = [1, 1]} : vector<8x2xbf16> to vector<8x1xbf16>
    %3 = vector.shape_cast %2 : vector<8x1xbf16> to vector<8x1x1xbf16>
    %c0_1 = arith.constant 0 : index
    %c0_2 = arith.constant 0 : index
    %c0_3 = arith.constant 0 : index
    %4 = vector.load %arg2[%c0_1, %c0_2, %c0_3] : memref<2x4x256xbf16, #tpu.memory_space<vmem>>, vector<1x4x256xbf16>
    %5 = vector.shape_cast %4 : vector<1x4x256xbf16> to vector<4x256xbf16>
    %6 = vector.shape_cast %5 : vector<4x256xbf16> to vector<1x4x256xbf16>
    %7 = vector.broadcast %3 : vector<8x1x1xbf16> to vector<8x4x256xbf16>
    %8 = vector.broadcast %6 : vector<1x4x256xbf16> to vector<8x4x256xbf16>
    %9 = arith.mulf %7, %8 : vector<8x4x256xbf16>
    %10 = arith.addf %1, %9 : vector<8x4x256xbf16>
    %11 = vector.extract_strided_slice %0 {offsets = [0, 1], sizes = [8, 1], strides = [1, 1]} : vector<8x2xbf16> to vector<8x1xbf16>
    %12 = vector.shape_cast %11 : vector<8x1xbf16> to vector<8x1x1xbf16>
    %c1 = arith.constant 1 : index
    %c0_4 = arith.constant 0 : index
    %c0_5 = arith.constant 0 : index
    %13 = vector.load %arg2[%c1, %c0_4, %c0_5] : memref<2x4x256xbf16, #tpu.memory_space<vmem>>, vector<1x4x256xbf16>
    %14 = vector.shape_cast %13 : vector<1x4x256xbf16> to vector<4x256xbf16>
    %15 = vector.shape_cast %14 : vector<4x256xbf16> to vector<1x4x256xbf16>
    %16 = vector.broadcast %12 : vector<8x1x1xbf16> to vector<8x4x256xbf16>
    %17 = vector.broadcast %15 : vector<1x4x256xbf16> to vector<8x4x256xbf16>
    %18 = arith.mulf %16, %17 : vector<8x4x256xbf16>
    %19 = arith.addf %10, %18 : vector<8x4x256xbf16>
    %c0_6 = arith.constant 0 : index
    %c0_7 = arith.constant 0 : index
    %c0_8 = arith.constant 0 : index
    %20 = vector.load %arg3[%c0_6, %c0_7, %c0_8] : memref<8x64x256xbf16, #tpu.memory_space<vmem>>, vector<8x64x256xbf16>
    "tpu.trace_start"() <{level = 10 : i32, message = "rcm,rjm->rcj"}> : () -> ()
    %cst_9 = arith.constant dense<0.000000e+00> : vector<8x4x64xf32>
    %21 = tpu.matmul %19, %20, %cst_9 {dimension_numbers = #tpu.dot_dimension_numbers<[2], [2], [1], [1], [0, 0, 0, 1, 1, 1], [0], [0]>} : vector<8x4x256xbf16>, vector<8x64x256xbf16>, vector<8x4x64xf32> -> vector<8x4x64xf32>
    "tpu.trace_stop"() : () -> ()
    %22 = arith.truncf %21 : vector<8x4x64xf32> to vector<8x4x64xbf16>
    %c0_10 = arith.constant 0 : index
    %c0_11 = arith.constant 0 : index
    %c0_12 = arith.constant 0 : index
    %23 = vector.load %arg4[%c0_10, %c0_11, %c0_12] : memref<8x4x64xbf16, #tpu.memory_space<vmem>>, vector<8x4x64xbf16>
    tpu.vector_store %arg4[%c0_10, %c0_11, %c0_12], %22 {strides = array<i32>} : memref<8x4x64xbf16, #tpu.memory_space<vmem>>, vector<8x4x64xbf16>,
    return
  }
  func.func @transform_0(%arg0: i32) -> (i32, i32) {
    %c0_i32 = arith.constant 0 : i32
    %c0_i32_0 = arith.constant 0 : i32
    return %arg0, %c0_i32 : i32, i32
  }
  func.func @transform_1(%arg0: i32) -> (i32, i32, i32) {
    %c0_i32 = arith.constant 0 : i32
    %c0_i32_0 = arith.constant 0 : i32
    %c0_i32_1 = arith.constant 0 : i32
    %c0_i32_2 = arith.constant 0 : i32
    return %c0_i32, %c0_i32_0, %c0_i32_1 : i32, i32, i32
  }
  func.func @transform_2(%arg0: i32) -> (i32, i32, i32) {
    %c0_i32 = arith.constant 0 : i32
    %c0_i32_0 = arith.constant 0 : i32
    %c0_i32_1 = arith.constant 0 : i32
    return %arg0, %c0_i32, %c0_i32_0 : i32, i32, i32
  }
  func.func @transform_3(%arg0: i32) -> (i32, i32, i32) {
    %c0_i32 = arith.constant 0 : i32
    %c0_i32_0 = arith.constant 0 : i32
    %c0_i32_1 = arith.constant 0 : i32
    return %arg0, %c0_i32, %c0_i32_0 : i32, i32, i32
  }
}

module attributes {stable_mosaic.version = 11 : i64} {
  func.func @_fused_box_head_kernel(%arg0: i32, %arg1: memref<8x256xbf16, #tpu.memory_space<vmem>>, %arg2: memref<256x128xbf16, #tpu.memory_space<vmem>>, %arg3: memref<1x128xf32, #tpu.memory_space<vmem>>, %arg4: memref<128x128xbf16, #tpu.memory_space<vmem>>, %arg5: memref<1x128xf32, #tpu.memory_space<vmem>>, %arg6: memref<128x128xbf16, #tpu.memory_space<vmem>>, %arg7: memref<1x128xf32, #tpu.memory_space<vmem>>, %arg8: memref<8x128xbf16, #tpu.memory_space<vmem>>, %arg9: memref<8x128xf32, #tpu.memory_space<vmem>>) attributes {dimension_semantics = [#tpu.dimension_semantics<parallel>], iteration_bounds = array<i64: 2>, scalar_prefetch = 0 : i64, scratch_operands = 0 : i64, tpu.core_type = #tpu.core_type<tc>, window_params = [{transform_indices = @transform_0, window_bounds = array<i64: 8, 256>}, {pipeline_mode = #tpu.pipeline_mode<synchronous>, transform_indices = @transform_1, window_bounds = array<i64: 256, 128>}, {pipeline_mode = #tpu.pipeline_mode<synchronous>, transform_indices = @transform_2, window_bounds = array<i64: 1, 128>}, {pipeline_mode = #tpu.pipeline_mode<synchronous>, transform_indices = @transform_3, window_bounds = array<i64: 128, 128>}, {pipeline_mode = #tpu.pipeline_mode<synchronous>, transform_indices = @transform_4, window_bounds = array<i64: 1, 128>}, {pipeline_mode = #tpu.pipeline_mode<synchronous>, transform_indices = @transform_5, window_bounds = array<i64: 128, 128>}, {pipeline_mode = #tpu.pipeline_mode<synchronous>, transform_indices = @transform_6, window_bounds = array<i64: 1, 128>}, {transform_indices = @transform_7, window_bounds = array<i64: 8, 128>}, {transform_indices = @transform_8, window_bounds = array<i64: 8, 128>}]} {
    %c0 = arith.constant 0 : index
    %c0_0 = arith.constant 0 : index
    %0 = vector.load %arg1[%c0, %c0_0] : memref<8x256xbf16, #tpu.memory_space<vmem>>, vector<8x256xbf16>
    %c0_1 = arith.constant 0 : index
    %c0_2 = arith.constant 0 : index
    %1 = vector.load %arg2[%c0_1, %c0_2] : memref<256x128xbf16, #tpu.memory_space<vmem>>, vector<256x128xbf16>
    %cst = arith.constant dense<0.000000e+00> : vector<8x128xf32>
    %2 = tpu.matmul %0, %1, %cst {dimension_numbers = #tpu.dot_dimension_numbers<[1], [0], [0], [1], [0, 0, 1, 1], [], []>} : vector<8x256xbf16>, vector<256x128xbf16>, vector<8x128xf32> -> vector<8x128xf32>
    %c0_3 = arith.constant 0 : index
    %c0_4 = arith.constant 0 : index
    %3 = vector.load %arg3[%c0_3, %c0_4] : memref<1x128xf32, #tpu.memory_space<vmem>>, vector<1x128xf32>
    %4 = vector.broadcast %3 : vector<1x128xf32> to vector<8x128xf32>
    %5 = arith.addf %2, %4 : vector<8x128xf32>
    %cst_5 = arith.constant 0.000000e+00 : f32
    %6 = vector.broadcast %cst_5 : f32 to vector<8x128xf32>
    %7 = arith.maximumf %5, %6 : vector<8x128xf32>
    %8 = arith.truncf %7 : vector<8x128xf32> to vector<8x128xbf16>
    %c0_6 = arith.constant 0 : index
    %c0_7 = arith.constant 0 : index
    %9 = vector.load %arg4[%c0_6, %c0_7] : memref<128x128xbf16, #tpu.memory_space<vmem>>, vector<128x128xbf16>
    %cst_8 = arith.constant dense<0.000000e+00> : vector<8x128xf32>
    %10 = tpu.matmul %8, %9, %cst_8 {dimension_numbers = #tpu.dot_dimension_numbers<[1], [0], [0], [1], [0, 0, 1, 1], [], []>} : vector<8x128xbf16>, vector<128x128xbf16>, vector<8x128xf32> -> vector<8x128xf32>
    %c0_9 = arith.constant 0 : index
    %c0_10 = arith.constant 0 : index
    %11 = vector.load %arg5[%c0_9, %c0_10] : memref<1x128xf32, #tpu.memory_space<vmem>>, vector<1x128xf32>
    %12 = vector.broadcast %11 : vector<1x128xf32> to vector<8x128xf32>
    %13 = arith.addf %10, %12 : vector<8x128xf32>
    %cst_11 = arith.constant 0.000000e+00 : f32
    %14 = vector.broadcast %cst_11 : f32 to vector<8x128xf32>
    %15 = arith.maximumf %13, %14 : vector<8x128xf32>
    %16 = arith.truncf %15 : vector<8x128xf32> to vector<8x128xbf16>
    %c0_12 = arith.constant 0 : index
    %c0_13 = arith.constant 0 : index
    %17 = vector.load %arg8[%c0_12, %c0_13] : memref<8x128xbf16, #tpu.memory_space<vmem>>, vector<8x128xbf16>
    tpu.vector_store %arg8[%c0_12, %c0_13], %16 {strides = array<i32>} : memref<8x128xbf16, #tpu.memory_space<vmem>>, vector<8x128xbf16>,
    %18 = arith.truncf %15 : vector<8x128xf32> to vector<8x128xbf16>
    %c0_14 = arith.constant 0 : index
    %c0_15 = arith.constant 0 : index
    %19 = vector.load %arg6[%c0_14, %c0_15] : memref<128x128xbf16, #tpu.memory_space<vmem>>, vector<128x128xbf16>
    %cst_16 = arith.constant dense<0.000000e+00> : vector<8x128xf32>
    %20 = tpu.matmul %18, %19, %cst_16 {dimension_numbers = #tpu.dot_dimension_numbers<[1], [0], [0], [1], [0, 0, 1, 1], [], []>} : vector<8x128xbf16>, vector<128x128xbf16>, vector<8x128xf32> -> vector<8x128xf32>
    %c0_17 = arith.constant 0 : index
    %c0_18 = arith.constant 0 : index
    %21 = vector.load %arg7[%c0_17, %c0_18] : memref<1x128xf32, #tpu.memory_space<vmem>>, vector<1x128xf32>
    %22 = vector.broadcast %21 : vector<1x128xf32> to vector<8x128xf32>
    %23 = arith.addf %20, %22 : vector<8x128xf32>
    %c0_19 = arith.constant 0 : index
    %c0_20 = arith.constant 0 : index
    %24 = vector.load %arg9[%c0_19, %c0_20] : memref<8x128xf32, #tpu.memory_space<vmem>>, vector<8x128xf32>
    tpu.vector_store %arg9[%c0_19, %c0_20], %23 {strides = array<i32>} : memref<8x128xf32, #tpu.memory_space<vmem>>, vector<8x128xf32>,
    return
  }
  func.func @transform_0(%arg0: i32) -> (i32, i32) {
    %c0_i32 = arith.constant 0 : i32
    %c0_i32_0 = arith.constant 0 : i32
    return %arg0, %c0_i32 : i32, i32
  }
  func.func @transform_1(%arg0: i32) -> (i32, i32) {
    %c0_i32 = arith.constant 0 : i32
    %c0_i32_0 = arith.constant 0 : i32
    %c0_i32_1 = arith.constant 0 : i32
    return %c0_i32, %c0_i32_0 : i32, i32
  }
  func.func @transform_2(%arg0: i32) -> (i32, i32) {
    %c0_i32 = arith.constant 0 : i32
    %c0_i32_0 = arith.constant 0 : i32
    %c0_i32_1 = arith.constant 0 : i32
    return %c0_i32, %c0_i32_0 : i32, i32
  }
  func.func @transform_3(%arg0: i32) -> (i32, i32) {
    %c0_i32 = arith.constant 0 : i32
    %c0_i32_0 = arith.constant 0 : i32
    %c0_i32_1 = arith.constant 0 : i32
    return %c0_i32, %c0_i32_0 : i32, i32
  }
  func.func @transform_4(%arg0: i32) -> (i32, i32) {
    %c0_i32 = arith.constant 0 : i32
    %c0_i32_0 = arith.constant 0 : i32
    %c0_i32_1 = arith.constant 0 : i32
    return %c0_i32, %c0_i32_0 : i32, i32
  }
  func.func @transform_5(%arg0: i32) -> (i32, i32) {
    %c0_i32 = arith.constant 0 : i32
    %c0_i32_0 = arith.constant 0 : i32
    %c0_i32_1 = arith.constant 0 : i32
    return %c0_i32, %c0_i32_0 : i32, i32
  }
  func.func @transform_6(%arg0: i32) -> (i32, i32) {
    %c0_i32 = arith.constant 0 : i32
    %c0_i32_0 = arith.constant 0 : i32
    %c0_i32_1 = arith.constant 0 : i32
    return %c0_i32, %c0_i32_0 : i32, i32
  }
  func.func @transform_7(%arg0: i32) -> (i32, i32) {
    %c0_i32 = arith.constant 0 : i32
    %c0_i32_0 = arith.constant 0 : i32
    return %arg0, %c0_i32 : i32, i32
  }
  func.func @transform_8(%arg0: i32) -> (i32, i32) {
    %c0_i32 = arith.constant 0 : i32
    %c0_i32_0 = arith.constant 0 : i32
    return %arg0, %c0_i32 : i32, i32
  }
}

</mosaic_0001>

<bundles_post_ra>
// kernel: roi_box_head_forward.3
= control target key start
LH: loop header
LB: loop body
LE: loop exit
PB: predicated region body
PF: predicated region fallthrough
CT: control target
= control target key end

     0   :  { %s1039_s27 = smov 0   ;;  %s1190_s0 = inlined_call_operand.vmem [shape: bf16[16,256], index: 0, kind: input, shape index: {}]   ;;  %s1191_s1 = inlined_call_operand.vmem [shape: bf16[256,128], index: 1, kind: input, shape index: {}]   ;;  %s1192_s2 = inlined_call_operand.vmem [shape: f32[1,128], index: 2, kind: input, shape index: {}]   ;;  %s1193_s3 = inlined_call_operand.vmem [shape: bf16[128,128], index: 3, kind: input, shape index: {}]   ;;  %s1194_s4 = inlined_call_operand.vmem [shape: f32[1,128], index: 4, kind: input, shape index: {}]   ;;  %s1195_s5 = inlined_call_operand.vmem [shape: bf16[128,128], index: 5, kind: input, shape index: {}]   ;;  %s1196_s6 = inlined_call_operand.vmem [shape: f32[1,128], index: 6, kind: input, shape index: {}]   ;;  %s1197_s7 = inlined_call_operand.vmem [shape: bf16[16,128], index: 7, kind: output, shape index: {0}]   ;;  %s1198_s8 = inlined_call_operand.vmem [shape: f32[16,128], index: 8, kind: output, shape index: {1}]  }
   0x1 LB: > { %s811_s28 = sadd.s32 4294967295, %s990_s27   ;;  %p815_p0 = scmp.ge.s32.totalorder %s990_s27, 1  ;;  %s990_s27 = sphi %s1039_s27, %s19_s27  }
   0x2   : > { %p265_p1 = scmp.lt.s32.totalorder %s990_s27, 3 }
   0x4   : > { %p266_p2 = pnand %p815_p0, %p265_p1 }
   0x5   : > { %p302_p3 = scmp.lt.s32.totalorder (!%p266_p2), %s811_s28, 1 }
   0x6   : > { %269 = sbr.rel (%p266_p2) target bundleno = 645 (0x285), region = 48 }
   0xb   : > { %v950_v0 = vld [vmem:[%s1191_s1 + $0x78] sm:$0xff]   ;;  %v952_v2 = vld [vmem:[%s1191_s1 + $0x70] sm:$0xff]   ;;  %v992_v3 = vmov 0.0   ;;  %v954_v5 = vld [vmem:[%s1191_s1 + $0x68] sm:$0xff]   ;;  %s1200_s28 = smov (!%p302_p3, %s811_s28), 1  ;;  %vm993_vm0 = vmmov 0  }
   0xc   : > { %v951_v1 = vld [vmem:[%s1191_s1 + $0x38] sm:$0xff]   ;;  %860 = vmatprep.subr.bf16.mxu0 %v950_v0  ;;  %900 = vmatprep.subr.bf16.mxu1 %v992_v3  ;;  %v953_v4 = vld [vmem:[%s1191_s1 + $0x30] sm:$0xff]   ;;  %v955_v6 = vld [vmem:[%s1191_s1 + $0x28] sm:$0xff]   ;;  %s859_s21 = sshll.u32 %s1200_s28, 3  ;;  %s818_s22 = sshll.u32 %s1200_s28, 2 }
   0xd   : > { %861 = vmatpush3.bf16.msra.mxu0 %v951_v1  ;;  %v956_v7 = vld [vmem:[%s1191_s1 + $0x60] sm:$0xff]   ;;  %v958_v9 = vld [vmem:[%s1191_s1 + $0x58] sm:$0xff]   ;;  %s306_s30 = scalar_lea.vmem %s1190_s0, %s859_s21  ;;  %v960_v11 = vld [vmem:[%s1191_s1 + $0x50] sm:$0xff]   ;;  %916 = vmatprep.mubr.msk.bf16.mxu1 %vm993_vm0, %v992_v3  ;;  %s310_s25 = scalar_lea.vmem %s1197_s7, %s818_s22 }
   0xe   : > { %862 = vmatprep.subr.bf16.mxu0 %v952_v2  ;;  %v957_v8 = vld [vmem:[%s1191_s1 + $0x20] sm:$0xff]   ;;  %v959_v10 = vld [vmem:[%s1191_s1 + $0x18] sm:$0xff]   ;;  %v961_v15 = vld [vmem:[%s1191_s1 + $0x10] sm:$0xff]   ;;  %s314_s10 = scalar_lea.vmem %s1198_s8, %s859_s21 }
   0xf   : > { %v316_v12 = vld [vmem:[%s306_s30] sm:$0xff]  ;;  %v968_v14 = vld [vmem:[%s1193_s3 + $0x38] sm:$0xff]   ;;  %v962_v16 = vld [vmem:[%s1191_s1 + $0x48] sm:$0xff]  }
  0x10   : > { %v822_v13 = vcombine.high %v316_v12, %v316_v12  ;;  %901 = vmatpush3.bf16.msra.mxu1 %v968_v14  ;;  %v969_v17 = vld [vmem:[%s1193_s3 + $0x30] sm:$0xff]   ;;  %v963_v18 = vld [vmem:[%s1191_s1 + $0x8] sm:$0xff]   ;;  %v964_v19 = vld [vmem:[%s1191_s1 + $0x40] sm:$0xff]   ;;  %v821_v23 = vcombine.low %v316_v12, %v316_v12 }
  0x11   : > { %863 = vmatpush3.bf16.msra.mxu0 %v953_v4  ;;  %902 = vmatprep.subr.bf16.mxu1 %v992_v3  ;;  %v970_v20 = vld [vmem:[%s1193_s3 + $0x28] sm:$0xff]   ;;  %v965_v21 = vld [vmem:[%s1191_s1] sm:$0xff]   ;;  %v972_v24 = vld [vmem:[%s1193_s3 + $0x18] sm:$0xff]  }
  0x12   : > { %864 = vmatprep.subr.bf16.mxu0 %v954_v5  ;;  %491 = vmatprep.mubr.bf16.mxu0 %v822_v13  ;;  %v971_v22 = vld [vmem:[%s1193_s3 + $0x20] sm:$0xff]   ;;  %v973_v25 = vld [vmem:[%s1193_s3 + $0x10] sm:$0xff]   ;;  %v974_v26 = vld [vmem:[%s1193_s3 + $0x8] sm:$0xff]  }
  0x13   : > { %v975_v27 = vld [vmem:[%s1193_s3] sm:$0xff]   ;;  %v976_v28 = vld [vmem:[%s1195_s5 + $0x38] sm:$0xff]   ;;  %v977_v29 = vld [vmem:[%s1195_s5 + $0x30] sm:$0xff]  }
  0x14   : > { %903 = vmatpush3.bf16.msra.mxu1 %v969_v17  ;;  %v978_v30 = vld [vmem:[%s1195_s5 + $0x28] sm:$0xff]   ;;  %v979_v31 = vld [vmem:[%s1195_s5 + $0x20] sm:$0xff]   ;;  %v980_v32 = vld [vmem:[%s1195_s5 + $0x18] sm:$0xff]  }
  0x15   : > { %865 = vmatpush3.bf16.msra.mxu0 %v955_v6  ;;  %904 = vmatprep.subr.bf16.mxu1 %v992_v3  ;;  %v981_v33 = vld [vmem:[%s1195_s5 + $0x10] sm:$0xff]   ;;  %v820_v35 = vld [vmem:[%s1192_s2] ss:$0 sm:$0xff]  ;;  %v982_v43 = vld [vmem:[%s1195_s5 + $0x8] sm:$0xff]  }
  0x16   : > { %866 = vmatprep.subr.bf16.mxu0 %v956_v7  ;;  %v983_v44 = vld [vmem:[%s1195_s5] sm:$0xff]  }
  0x17   : > { %v839_v45 = vld [vmem:[%s1194_s4] ss:$0 sm:$0xff] }
  0x18   : > { %905 = vmatpush3.bf16.msra.mxu1 %v970_v20  ;;  %v848_v53 = vld [vmem:[%s1196_s6] ss:$0 sm:$0xff] }
  0x19   : > { %867 = vmatpush3.bf16.msra.mxu0 %v957_v8  ;;  %906 = vmatprep.subr.bf16.mxu1 %v992_v3 }
  0x1a   : > { %868 = vmatprep.subr.bf16.mxu0 %v958_v9 }
  0x1c   : > { %907 = vmatpush3.bf16.msra.mxu1 %v971_v22 }
  0x1d   : > { %869 = vmatpush3.bf16.msra.mxu0 %v959_v10  ;;  %908 = vmatprep.subr.bf16.mxu1 %v992_v3 }
  0x1e   : > { %870 = vmatprep.subr.bf16.mxu0 %v960_v11 }
  0x20   : > { %909 = vmatpush3.bf16.msra.mxu1 %v972_v24 }
  0x21   : > { %871 = vmatpush3.bf16.msra.mxu0 %v961_v15  ;;  %910 = vmatprep.subr.bf16.mxu1 %v992_v3 }
  0x22   : > { %872 = vmatprep.subr.bf16.mxu0 %v962_v16 }
  0x24   : > { %911 = vmatpush3.bf16.msra.mxu1 %v973_v25 }
  0x25   : > { %873 = vmatpush3.bf16.msra.mxu0 %v963_v18  ;;  %912 = vmatprep.subr.bf16.mxu1 %v992_v3 }
  0x26   : > { %874 = vmatprep.subr.bf16.mxu0 %v964_v19 }
  0x28   : > { %913 = vmatpush3.bf16.msra.mxu1 %v974_v26 }
  0x29   : > { %875 = vmatpush3.bf16.msra.mxu0 %v965_v21  ;;  %914 = vmatprep.subr.bf16.mxu1 %v992_v3 }
  0x2a   : > { %920 = vmatprep.subr.bf16.mxu0 %v992_v3 }
  0x2c   : > { %492 = vmatmul.mubr.bf16.vlgmr.msra.gmra.mxu0 %v821_v23  ;;  %915 = vmatpush3.bf16.msra.mxu1 %v975_v27 }
  0x2d   : > { %936 = vmatprep.mubr.msk.bf16.mxu0 %vm993_vm0, %v992_v3  ;;  %921 = vmatpush3.bf16.msra.mxu0 %v976_v28 }
  0x2e   : > { %922 = vmatprep.subr.bf16.mxu0 %v992_v3 }
  0x31   : > { %923 = vmatpush3.bf16.msra.mxu0 %v977_v29 }
  0x32   : > { %924 = vmatprep.subr.bf16.mxu0 %v992_v3 }
  0x35   : > { %925 = vmatpush3.bf16.msra.mxu0 %v978_v30 }
  0x36   : > { %926 = vmatprep.subr.bf16.mxu0 %v992_v3 }
  0x39   : > { %927 = vmatpush3.bf16.msra.mxu0 %v979_v31 }
  0x3a   : > { %928 = vmatprep.subr.bf16.mxu0 %v992_v3 }
  0x3d   : > { %929 = vmatpush3.bf16.msra.mxu0 %v980_v32 }
  0x3e   : > { %930 = vmatprep.subr.bf16.mxu0 %v992_v3 }
  0x41   : > { %931 = vmatpush3.bf16.msra.mxu0 %v981_v33 }
  0x42   : > { %932 = vmatprep.subr.bf16.mxu0 %v992_v3 }
  0x45   : > { %933 = vmatpush3.bf16.msra.mxu0 %v982_v43 }
  0x46   : > { %934 = vmatprep.subr.bf16.mxu0 %v992_v3 }
  0x49   : > { %935 = vmatpush3.bf16.msra.mxu0 %v983_v44 }
  0xec   : > { %v876_v34 = vpop.f32.mrf.mxu0 }
  0xee   : > { %v877_v36 = vpop.f32.mrf.mxu0 }
  0xef   : > { %v878_v37 = vadd.f32 %v877_v36, %v876_v34 }
  0xf0   : > { %v879_v38 = vpop.f32.mrf.mxu0 }
  0xf1   : > { %v494_v39 = vadd.f32 %v878_v37, %v820_v35 }
  0xf2   : > { %v880_v40 = vpop.f32.mrf.mxu0 }
  0xf3   : > { %v499_v41 = vmax.f32 %v494_v39, 0.0 }
  0xf5   : > { %v500_v42 = vpack.c.bf16 %v499_v41, %v499_v41 }
  0xf7   : > { %917 = vmatmul.mubr.bf16.vlgmr.msra.gmra.mxu1 %v500_v42 }
 0x1b7   : > { %v606_v46 = vpop.f32.mrf.mxu1 }
 0x1b8   : > { %v607_v47 = vadd.f32 %v839_v45, %v606_v46 }
 0x1b9   : > { %v918_v48 = vpop.f32.mrf.mxu1 }
 0x1ba   : > { %v612_v49 = vmax.f32 %v607_v47, 0.0 }
 0x1bb   : > { %v609_v50 = vpop.f32.mrf.mxu1 }
 0x1bc   : > { %v613_v51 = vpack.c.bf16 %v612_v49, %v612_v49 }
 0x1bd   : > { %v919_v52 = vpop.f32.mrf.mxu1 }
 0x1be   : > { %614 = vst [vmem:[%s310_s25] sm:$0xf] %v613_v51  ;;  %937 = vmatmul.mubr.bf16.vlgmr.msra.gmra.mxu0 %v613_v51 }
 0x27e   : > { %v720_v54 = vpop.f32.mrf.mxu0 }
 0x27f   : > { %v721_v55 = vadd.f32 %v848_v53, %v720_v54 }
 0x280   : > { %v938_v56 = vpop.f32.mrf.mxu0 }
 0x281   : > { %726 = vst [vmem:[%s314_s10] sm:$0xff] %v721_v55 }
 0x282   : > { %v723_v57 = vpop.f32.mrf.mxu0 }
 0x284   : > { %v939_v58 = vpop.f32.mrf.mxu0 }
 0x285 PF: > { %s19_s27 = sadd.s32 1, %s990_s27  }
 0x286   : > { %p16_p4 = scmp.ge.s32.totalorder %s19_s27, 4  }
 0x288   :  { %18 = sbr.rel (!%p16_p4) target bundleno = 1 (0x1), region = 90 }

// kernel: roi_box_head_forward.2
= control target key start
LH: loop header
LB: loop body
LE: loop exit
PB: predicated region body
PF: predicated region fallthrough
CT: control target
= control target key end

     0   :  { %s1531_s12 = smov 0   ;;  %s1743_s0 = inlined_call_operand.vmem [shape: bf16[16,2], index: 0, kind: input, shape index: {}]   ;;  %s1744_s1 = inlined_call_operand.vmem [shape: bf16[2,4,256], index: 1, kind: input, shape index: {}]   ;;  %s1745_s2 = inlined_call_operand.vmem [shape: bf16[16,64,256], index: 2, kind: input, shape index: {}]   ;;  %s1746_s3 = inlined_call_operand.vmem [shape: bf16[16,4,64], index: 3, kind: output, shape index: {}]  }
   0x1 LB: > { %s1537_s13 = sadd.s32 4294967295, %s1506_s12   ;;  %p1281_p0 = scmp.ge.s32.totalorder %s1506_s12, 1  ;;  %s1506_s12 = sphi %s1531_s12, %s13_s12  }
   0x2   : > { %p148_p1 = scmp.lt.s32.totalorder %s1506_s12, 3 }
   0x4   : > { %p149_p2 = pnand %p1281_p0, %p148_p1 }
   0x5   : > { %p177_p3 = scmp.lt.s32.totalorder (!%p149_p2), %s1537_s13, 1  ;;  %s1509_s19 = smov (!%p149_p2), 127  }
   0x6   : > { %152 = sbr.rel (%p149_p2) target bundleno = 500 (0x1f4), region = 32  ;;  %s1283_s20 = sshll.u32 (!%p149_p2), %s1537_s13, 3 }
   0x7   : > { %p182_p4 = scmp.lt.s32.totalorder (!%p149_p2), %s1283_s20, 15 }
   0xb   : > { %v208_v0 = vlaneseq  ;;  %v1508_v1 = vmov 1966171168   ;;  %s178_s14 = scalar_select %p177_p3, %s1537_s13, 1  ;;  %v1600_v53 = vld [vmem:[%s1744_s1] sm:$0xf]  ;;  %vm1200_vm0 = vcmask 517120  }
   0xc   : > { %v206_v2 = vunpack.c.l.s4 %v1508_v1  ;;  %s1748_s20 = smov (!%p182_p4, %s1283_s20), 15 }
   0xd   : > { %v1543_v3 = vshrl.u32 %v208_v0, 7  ;;  %s1282_s15 = sshll.u32 %s178_s14, 2  ;;  %s1360_s21 = sshll.u32 %s1748_s20, 6 }
   0xe   : > { %v207_v4 = vunpack.c.0.s8 %v206_v2  ;;  %s180_s18 = scalar_lea.vmem %s1743_s0, %s1282_s15  ;;  %s1561_s24 = scalar_lea.vmem %s1745_s2, %s1360_s21  ;;  %v1510_v2 = vmov 1983009808  }
   0xf   : > { %v1288_v6 = vld.sshfl [vmem:[%s180_s18] sm:$0x33 pattern:$0x75316420]  ;;  %v240_v8 = vsub.s32 0, %v1543_v3 }
  0x10   : > { %v210_v5 = vsub.s32 %v207_v4, %v1543_v3  ;;  %v204_v9 = vcombine.high %v1288_v6, %v1288_v6  ;;  %v1404_v33 = vld [vmem:[%s1561_s24 + $0x34] ss:$8 sps:$4 sm:$0xff]   ;;  %v1406_v34 = vld [vmem:[%s1561_s24 + $0x30] ss:$8 sps:$4 sm:$0xff]   ;;  %v1410_v37 = vld [vmem:[%s1561_s24 + $0x24] ss:$8 sps:$4 sm:$0xff]   ;;  %v466_v4 = vunpack.c.l.s4 %v1510_v2 }
  0x11   : > { %523 = vmatprep.subr.bf16.mxu0 %v1404_v33  ;;  %v1407_v35 = vld [vmem:[%s1561_s24 + $0x74] ss:$8 sps:$4 sm:$0xff]   ;;  %v1409_v36 = vld [vmem:[%s1561_s24 + $0x70] ss:$8 sps:$4 sm:$0xff]   ;;  %v1413_v38 = vld [vmem:[%s1561_s24 + $0x64] ss:$8 sps:$4 sm:$0xff]  }
  0x12   : > { %v211_v7 = vrot.slane %v1288_v6, %v210_v5  ;;  %v218_v11 = vrot.slane %v204_v9, %v210_v5  ;;  %524 = vmatpush1.bf16.xpose.msra.mxu0 %v1406_v34  ;;  %614 = vmatprep.subr.bf16.mxu1 %v1407_v35  ;;  %v1412_v39 = vld [vmem:[%s1561_s24 + $0x20] ss:$8 sps:$4 sm:$0xff]   ;;  %v1416_v40 = vld [vmem:[%s1561_s24 + $0x14] ss:$8 sps:$4 sm:$0xff]   ;;  %v1418_v42 = vld [vmem:[%s1561_s24 + $0x10] ss:$8 sps:$4 sm:$0xff]  }
  0x13   : > { %615 = vmatpush1.bf16.xpose.msra.mxu1 %v1409_v36  ;;  %525 = vmatprep.subr.bf16.mxu0 %v1410_v37  ;;  %v1415_v41 = vld [vmem:[%s1561_s24 + $0x60] ss:$8 sps:$4 sm:$0xff]   ;;  %v1419_v43 = vld [vmem:[%s1561_s24 + $0x54] ss:$8 sps:$4 sm:$0xff]   ;;  %v1421_v44 = vld [vmem:[%s1561_s24 + $0x50] ss:$8 sps:$4 sm:$0xff]  }
  0x14   : > { %v1289_v10 = vpack.i.b16 %v211_v7, %v211_v7  ;;  %v222_v12 = vunpack.i.h.s16 %v211_v7  ;;  %v219_v13 = vcombine.high %v211_v7, %v211_v7  ;;  %v1290_v15 = vpack.i.b16 %v218_v11, %v218_v11  ;;  %616 = vmatprep.subr.bf16.mxu1 %v1413_v38  ;;  %v1422_v45 = vld [vmem:[%s1561_s24 + $0x4] ss:$8 sps:$4 sm:$0xff]   ;;  %v1424_v46 = vld [vmem:[%s1561_s24] ss:$8 sps:$4 sm:$0xff]   ;;  %v1430_v49 = vld [vmem:[%s1561_s24 + $0xb4] ss:$8 sps:$4 sm:$0xff]  }
  0x15   : > { %v224_v17 = vunpack.i.h.s16 %v218_v11  ;;  %v220_v20 = vcombine.high %v218_v11, %v218_v11  ;;  %v1425_v47 = vld [vmem:[%s1561_s24 + $0x44] ss:$8 sps:$4 sm:$0xff]   ;;  %v1427_v48 = vld [vmem:[%s1561_s24 + $0x40] ss:$8 sps:$4 sm:$0xff]   ;;  %v1433_v50 = vld [vmem:[%s1561_s24 + $0xf4] ss:$8 sps:$4 sm:$0xff]  }
  0x16   : > { %v241_v14 = vrot.slane %v1289_v10, %v240_v8  ;;  %v231_v16 = vpack.i.b16 %v222_v12, %v222_v12  ;;  %v1291_v18 = vpack.i.b16 %v219_v13, %v219_v13  ;;  %v226_v19 = vunpack.i.h.s16 %v219_v13  ;;  %v1613_v12 = vld [vmem:[%s1744_s1 + $0x4] sm:$0xf]  ;;  %v1428_v37 = vld [vmem:[%s1561_s24 + $0xb0] ss:$8 sps:$4 sm:$0xff]  }
  0x17   : > { %v249_v21 = vrot.slane %v1290_v15, %v240_v8  ;;  %v233_v23 = vpack.i.b16 %v224_v17, %v224_v17  ;;  %v1292_v25 = vpack.i.b16 %v220_v20, %v220_v20  ;;  %v228_v26 = vunpack.i.h.s16 %v220_v20 }
  0x18   : > { %328 = vrot.lane.b32.xlu0 %v241_v14, %s1509_s19  ;;  %v245_v22 = vrot.slane %v231_v16, %v240_v8  ;;  %1361 = vpush %v241_v14  ;;  %v235_v24 = vpack.i.b16 %v226_v19, %v226_v19  ;;  %v257_v28 = vrot.slane %v1291_v18, %v240_v8  ;;  %v467_v10 = vunpack.c.0.s8 %v466_v4 }
  0x19   : > { %332 = vrot.lane.b32.xlu1 %v249_v21, %s1509_s19  ;;  %v253_v27 = vrot.slane %v233_v23, %v240_v8  ;;  %v237_v29 = vpack.i.b16 %v228_v26, %v228_v26  ;;  %v265_v31 = vrot.slane %v1292_v25, %v240_v8 }
  0x1a   : > { %1363 = vpush %v245_v22  ;;  %v261_v30 = vrot.slane %v235_v24, %v240_v8  ;;  %526 = vmatpush1.bf16.xpose.msra.mxu0 %v1412_v39  ;;  %v1618_v18 = vsub.s32 %v467_v10, %v1543_v3  ;;  %v1448_v10 = vld [vmem:[%s1561_s24 + $0x84] ss:$8 sps:$4 sm:$0xff]  }
  0x1b   : > { %1365 = vpush %v249_v21  ;;  %v269_v32 = vrot.slane %v237_v29, %v240_v8  ;;  %527 = vmatprep.subr.bf16.mxu0 %v1416_v40  ;;  %617 = vmatpush1.bf16.xpose.msra.mxu1 %v1415_v41  ;;  %v1436_v40 = vld [vmem:[%s1561_s24 + $0xa4] ss:$8 sps:$4 sm:$0xff]  }
  0x1c   : > { %330 = vrot.lane.b32.xlu0 %v245_v22, %s1509_s19  ;;  %1367 = vpush %v253_v27  ;;  %618 = vmatprep.subr.bf16.mxu1 %v1419_v43 }
  0x1d   : > { %1369 = vpush %v257_v28  ;;  %334 = vrot.lane.b32.xlu1 %v253_v27, %s1509_s19 }
  0x1e   : > { %1371 = vpush %v261_v30 }
  0x1f   : > { %1373 = vpush %v265_v31 }
  0x20   : > { %336 = vrot.lane.b32.xlu0 %v257_v28, %s1509_s19  ;;  %1375 = vpush %v269_v32 }
  0x21   : > { %338 = vrot.lane.b32.xlu1 %v261_v30, %s1509_s19 }
  0x22   : > { %528 = vmatpush1.bf16.xpose.msra.mxu0 %v1418_v42 }
  0x23   : > { %619 = vmatpush1.bf16.xpose.msra.mxu1 %v1421_v44  ;;  %529 = vmatprep.subr.bf16.mxu0 %v1422_v45 }
  0x24   : > { %340 = vrot.lane.b32.xlu0 %v265_v31, %s1509_s19  ;;  %620 = vmatprep.subr.bf16.mxu1 %v1425_v47 }
  0x25   : > { %342 = vrot.lane.b32.xlu1 %v269_v32, %s1509_s19  ;;  %s1287_s19 = sshll.u32 %s1748_s20, 1 }
  0x26   : > { %s1722_s23 = scalar_lea.vmem %s1746_s3, %s1287_s19 }
  0x2a   : > { %530 = vmatpush1.bf16.xpose.msra.mxu0 %v1424_v46 }
  0x2b   : > { %621 = vmatpush1.bf16.xpose.msra.mxu1 %v1427_v48  ;;  %705 = vmatprep.subr.bf16.mxu0 %v1430_v49  ;;  %v1431_v48 = vld [vmem:[%s1561_s24 + $0xf0] ss:$8 sps:$4 sm:$0xff]  }
  0x2c   : > { %796 = vmatprep.subr.bf16.mxu1 %v1433_v50 }
  0x49   : > { %s1362_s25 = spop %1361 }
  0x4a   : > { %v272_v63 = vstv %s1362_s25 }
  0x4b   : > { %s1584_s26 = spop %1363  ;;  %v273_v0 = vpack.i.b16 %v272_v63, %v272_v63 }
  0x4c   : > { %s1587_s27 = spop %1365  ;;  %v277_v1 = vstv %s1584_s26 }
  0x4d   : > { %s1589_s28 = spop %1367  ;;  %v282_v5 = vstv %s1587_s27  ;;  %v310_v7 = vmul.bf16 %v273_v0, %v1600_v53  ;;  %v278_v8 = vpack.i.b16 %v277_v1, %v277_v1  ;;  %v1437_v1 = vld [vmem:[%s1561_s24 + $0xe0] ss:$8 sps:$4 sm:$0xff]  }
  0x4e   : > { %s1591_s29 = spop %1369  ;;  %v287_v6 = vstv %s1589_s28  ;;  %v283_v9 = vpack.i.b16 %v282_v5, %v282_v5  ;;  %v1445_v5 = vld [vmem:[%s1561_s24 + $0xd4] ss:$8 sps:$4 sm:$0xff]  }
  0x4f   : > { %s1593_s30 = spop %1371  ;;  %v288_v11 = vpack.i.b16 %v287_v6, %v287_v6  ;;  %v318_v14 = vadd.bf16 0, %v310_v7  ;;  %v311_v15 = vmul.bf16 %v278_v8, %v1600_v53  ;;  %v292_v4 = vstv %s1591_s29  ;;  %v1440_v8 = vld [vmem:[%s1561_s24 + $0x90] ss:$8 sps:$4 sm:$0xff]  }
  0x50   : > { %s1374_s4 = spop %1373  ;;  %v312_v17 = vmul.bf16 %v283_v9, %v1600_v53  ;;  %v293_v7 = vpack.i.b16 %v292_v4, %v292_v4  ;;  %v297_v9 = vstv %s1593_s30 }
  0x51   : > { %v302_v51 = vstv %s1374_s4  ;;  %s1608_s7 = spop %1375  ;;  %v313_v19 = vmul.bf16 %v288_v11, %v1600_v53  ;;  %v319_v22 = vadd.bf16 0, %v311_v15  ;;  %v298_v15 = vpack.i.b16 %v297_v9, %v297_v9 }
  0x52   : > { %v1595_v52 = vpack.i.b16 %v302_v51, %v302_v51  ;;  %v320_v26 = vadd.bf16 0, %v312_v17  ;;  %v307_v27 = vstv %s1608_s7  ;;  %v1451_v17 = vld [vmem:[%s1561_s24 + $0xc4] ss:$8 sps:$4 sm:$0xff]  }
  0x53   : > { %v321_v3 = vadd.bf16 0, %v313_v19  ;;  %v308_v34 = vpack.i.b16 %v307_v27, %v307_v27 }
  0x54   : > { %v316_v54 = vmul.bf16 %v1595_v52, %v1600_v53  ;;  %v1434_v52 = vld [vmem:[%s1561_s24 + $0xa0] ss:$8 sps:$4 sm:$0xff]  }
  0x55   : > { %v317_v45 = vmul.bf16 %v308_v34, %v1600_v53  ;;  %v1463_v34 = vld [vmem:[%s1561_s24 + $0x164] ss:$8 sps:$4 sm:$0xff]  }
  0x8a   : > { %v329_v55 = vpop.permute.xlu0 %328 }
  0x8b   : > { %1377 = vpush %v329_v55  ;;  %v333_v56 = vpop.permute.xlu1 %332  ;;  %v1439_v55 = vld [vmem:[%s1561_s24 + $0xe4] ss:$8 sps:$4 sm:$0xff]  }
  0x8e   : > { %v331_v57 = vpop.permute.xlu0 %330 }
  0x8f   : > { %1379 = vpush %v331_v57  ;;  %v335_v58 = vpop.permute.xlu1 %334 }
  0x90   : > { %1381 = vpush %v333_v56  ;;  %v324_v56 = vadd.bf16 0, %v316_v54  ;;  %v1442_v54 = vld [vmem:[%s1561_s24 + $0x94] ss:$8 sps:$4 sm:$0xff]  }
  0x91   : > { %1383 = vpush %v335_v58 }
  0x92   : > { %v337_v59 = vpop.permute.xlu0 %336 }
  0x93   : > { %1385 = vpush %v337_v59  ;;  %v339_v60 = vpop.permute.xlu1 %338 }
  0x94   : > { %1387 = vpush %v339_v60  ;;  %v325_v60 = vadd.bf16 0, %v317_v45  ;;  %v1473_v45 = vld [vmem:[%s1561_s24 + $0x140] ss:$8 sps:$4 sm:$0xff]  }
  0x96   : > { %v341_v61 = vpop.permute.xlu0 %340 }
  0x97   : > { %1389 = vpush %v341_v61  ;;  %v343_v62 = vpop.permute.xlu1 %342 }
  0x98   : > { %1391 = vpush %v343_v62 }
  0xbc   : > { %s1378_s8 = spop %1377 }
  0xbd   : > { %v346_v13 = vstv %s1378_s8 }
  0xbe   : > { %v347_v16 = vpack.i.b16 %v346_v13, %v346_v13 }
  0xc0   : > { %v384_v20 = vmul.bf16 %v1613_v12, %v347_v16  ;;  %s1380_s11 = spop %1379  ;;  %v1443_v16 = vld [vmem:[%s1561_s24 + $0xd0] ss:$8 sps:$4 sm:$0xff]  }
  0xc1   : > { %v351_v21 = vstv %s1380_s11  ;;  %s1382_s13 = spop %1381 }
  0xc2   : > { %v352_v23 = vpack.i.b16 %v351_v21, %v351_v21  ;;  %v356_v24 = vstv %s1382_s13  ;;  %s1384_s14 = spop %1383  ;;  %v392_v25 = vadd.bf16 %v384_v20, %v318_v14  ;;  %v314_v14 = vmul.bf16 %v293_v7, %v1600_v53 }
  0xc3   : > { %v357_v28 = vpack.i.b16 %v356_v24, %v356_v24  ;;  %v361_v29 = vstv %s1384_s14  ;;  %v1454_v24 = vld [vmem:[%s1561_s24 + $0x134] ss:$8 sps:$4 sm:$0xff]  }
  0xc4   : > { %v385_v30 = vmul.bf16 %v1613_v12, %v352_v23  ;;  %v362_v31 = vpack.i.b16 %v361_v29, %v361_v29  ;;  %v471_v32 = vrot.slane %v392_v25, %v1618_v18  ;;  %s1627_s15 = spop %1385  ;;  %v322_v21 = vadd.bf16 0, %v314_v14  ;;  %v1446_v23 = vld [vmem:[%s1561_s24 + $0x80] ss:$8 sps:$4 sm:$0xff]   ;;  %v1457_v29 = vld [vmem:[%s1561_s24 + $0x174] ss:$8 sps:$4 sm:$0xff]  }
  0xc5   : > { %v386_v33 = vmul.bf16 %v1613_v12, %v357_v28  ;;  %s1630_s16 = spop %1387  ;;  %v366_v6 = vstv %s1627_s15  ;;  %v1449_v28 = vld [vmem:[%s1561_s24 + $0xc0] ss:$8 sps:$4 sm:$0xff]  }
  0xc6   : > { %v387_v35 = vmul.bf16 %v1613_v12, %v362_v31  ;;  %v472_v36 = vcombine.high %v471_v32, %v471_v32  ;;  %v393_v38 = vadd.bf16 %v385_v30, %v319_v22  ;;  %v367_v11 = vpack.i.b16 %v366_v6, %v366_v6  ;;  %v1460_v31 = vld [vmem:[%s1561_s24 + $0x124] ss:$8 sps:$4 sm:$0xff]  }
  0xc7   : > { %v394_v39 = vadd.bf16 %v386_v33, %v320_v26  ;;  %v371_v13 = vstv %s1630_s16  ;;  %v315_v22 = vmul.bf16 %v298_v15, %v1600_v53  ;;  %v1452_v53 = vld [vmem:[%s1561_s24 + $0x130] ss:$8 sps:$4 sm:$0xff]  }
  0xc8   : > { %v395_v41 = vadd.bf16 %v387_v35, %v321_v3  ;;  %s1390_s17 = spop %1389  ;;  %547 = vmatprep.mubr.bf16.mxu0 %v472_v36  ;;  %v562_v42 = vrot.slane %v393_v38, %v1618_v18  ;;  %v388_v19 = vmul.bf16 %v1613_v12, %v367_v11  ;;  %v372_v20 = vpack.i.b16 %v371_v13, %v371_v13  ;;  %v1455_v33 = vld [vmem:[%s1561_s24 + $0x170] ss:$8 sps:$4 sm:$0xff]   ;;  %v1458_v36 = vld [vmem:[%s1561_s24 + $0x120] ss:$8 sps:$4 sm:$0xff]   ;;  %v1469_v38 = vld [vmem:[%s1561_s24 + $0x154] ss:$8 sps:$4 sm:$0xff]  }
  0xc9   : > { %v376_v43 = vstv %s1390_s17  ;;  %548 = vmatmul.mubr.bf16.vlgmr.msra.gmra.mxu0 %v471_v32  ;;  %v1635_v44 = vrot.slane %v394_v39, %v1618_v18  ;;  %s1392_s18 = spop %1391  ;;  %v323_v27 = vadd.bf16 0, %v315_v22  ;;  %v1464_v39 = vld [vmem:[%s1561_s24 + $0x110] ss:$8 sps:$4 sm:$0xff]  }
  0xca   : > { %v377_v46 = vpack.i.b16 %v376_v43, %v376_v43  ;;  %706 = vmatpush1.bf16.xpose.msra.mxu0 %v1428_v37  ;;  %v563_v47 = vcombine.high %v562_v42, %v562_v42  ;;  %v381_v49 = vstv %s1392_s18  ;;  %v1642_v51 = vrot.slane %v395_v41, %v1618_v18  ;;  %v1461_v37 = vld [vmem:[%s1561_s24 + $0x160] ss:$8 sps:$4 sm:$0xff]   ;;  %v1467_v41 = vld [vmem:[%s1561_s24 + $0x150] ss:$8 sps:$4 sm:$0xff]  }
  0xcb   : > { %v654_v50 = vcombine.high %v1635_v44, %v1635_v44  ;;  %707 = vmatprep.subr.bf16.mxu0 %v1436_v40  ;;  %v382_v58 = vpack.i.b16 %v381_v49, %v381_v49  ;;  %v396_v25 = vadd.bf16 %v388_v19, %v322_v21  ;;  %v389_v26 = vmul.bf16 %v1613_v12, %v372_v20  ;;  %v1472_v40 = vld [vmem:[%s1561_s24 + $0x104] ss:$8 sps:$4 sm:$0xff]   ;;  %v1470_v43 = vld [vmem:[%s1561_s24 + $0x100] ss:$8 sps:$4 sm:$0xff]  }
  0xcc   : > { %v390_v57 = vmul.bf16 %v1613_v12, %v377_v46  ;;  %638 = vmatprep.mubr.bf16.mxu1 %v563_v47  ;;  %v745_v59 = vcombine.high %v1642_v51, %v1642_v51  ;;  %v1481_v46 = vld [vmem:[%s1561_s24 + $0x1f4] ss:$8 sps:$4 sm:$0xff]   ;;  %v1476_v47 = vld [vmem:[%s1561_s24 + $0x1b0] ss:$8 sps:$4 sm:$0xff]  }
  0xcd   : > { %639 = vmatmul.mubr.bf16.vlgmr.msra.gmra.mxu1 %v562_v42  ;;  %729 = vmatprep.mubr.bf16.mxu0 %v654_v50  ;;  %v391_v62 = vmul.bf16 %v1613_v12, %v382_v58  ;;  %v397_v3 = vadd.bf16 %v389_v26, %v323_v27  ;;  %v835_v30 = vrot.slane %v396_v25, %v1618_v18  ;;  %v1475_v42 = vld [vmem:[%s1561_s24 + $0x144] ss:$8 sps:$4 sm:$0xff]   ;;  %v1479_v50 = vld [vmem:[%s1561_s24 + $0x1f0] ss:$8 sps:$4 sm:$0xff]   ;;  %v1485_v58 = vld [vmem:[%s1561_s24 + $0x1e0] ss:$8 sps:$4 sm:$0xff]  }
  0xce   : > { %v398_v61 = vadd.bf16 %v390_v57, %v324_v56  ;;  %797 = vmatpush1.bf16.xpose.msra.mxu1 %v1431_v48  ;;  %820 = vmatprep.mubr.bf16.mxu1 %v745_v59  ;;  %v1484_v48 = vld [vmem:[%s1561_s24 + $0x1a4] ss:$8 sps:$4 sm:$0xff]   ;;  %v1482_v56 = vld [vmem:[%s1561_s24 + $0x1a0] ss:$8 sps:$4 sm:$0xff]   ;;  %v1490_v57 = vld [vmem:[%s1561_s24 + $0x194] ss:$8 sps:$4 sm:$0xff]  }
  0xcf   : > { %798 = vmatprep.subr.bf16.mxu1 %v1439_v55  ;;  %v399_v63 = vadd.bf16 %v391_v62, %v325_v60  ;;  %v836_v32 = vcombine.high %v835_v30, %v835_v30  ;;  %v926_v12 = vrot.slane %v397_v3, %v1618_v18  ;;  %v1493_v59 = vld [vmem:[%s1561_s24 + $0x1d4] ss:$8 sps:$4 sm:$0xff]   ;;  %v1488_v60 = vld [vmem:[%s1561_s24 + $0x190] ss:$8 sps:$4 sm:$0xff]  }
  0xd0   : > { %v1655_v0 = vrot.slane %v398_v61, %v1618_v18  ;;  %v1496_v61 = vld [vmem:[%s1561_s24 + $0x184] ss:$8 sps:$4 sm:$0xff]   ;;  %v1491_v62 = vld [vmem:[%s1561_s24 + $0x1d0] ss:$8 sps:$4 sm:$0xff]  }
  0xd1   : > { %v1659_v2 = vrot.slane %v399_v63, %v1618_v18  ;;  %v927_v35 = vcombine.high %v926_v12, %v926_v12  ;;  %v1466_v18 = vld [vmem:[%s1561_s24 + $0x114] ss:$8 sps:$4 sm:$0xff]   ;;  %v1497_v63 = vld [vmem:[%s1561_s24 + $0x1c0] ss:$8 sps:$4 sm:$0xff]  }
  0xd2   : > { %708 = vmatpush1.bf16.xpose.msra.mxu0 %v1434_v52  ;;  %v1018_v49 = vcombine.high %v1655_v0, %v1655_v0  ;;  %v1499_v52 = vld [vmem:[%s1561_s24 + $0x1c4] ss:$8 sps:$4 sm:$0xff]  }
  0xd3   : > { %709 = vmatprep.subr.bf16.mxu0 %v1442_v54  ;;  %v1109_v55 = vcombine.high %v1659_v2, %v1659_v2  ;;  %v1494_v54 = vld [vmem:[%s1561_s24 + $0x180] ss:$8 sps:$4 sm:$0xff]  }
  0xd6   : > { %799 = vmatpush1.bf16.xpose.msra.mxu1 %v1437_v1 }
  0xd7   : > { %800 = vmatprep.subr.bf16.mxu1 %v1445_v5 }
  0xda   : > { %710 = vmatpush1.bf16.xpose.msra.mxu0 %v1440_v8 }
  0xdb   : > { %711 = vmatprep.subr.bf16.mxu0 %v1448_v10 }
  0xde   : > { %801 = vmatpush1.bf16.xpose.msra.mxu1 %v1443_v16 }
  0xdf   : > { %802 = vmatprep.subr.bf16.mxu1 %v1451_v17 }
  0xe2   : > { %712 = vmatpush1.bf16.xpose.msra.mxu0 %v1446_v23 }
  0xe3   : > { %887 = vmatprep.subr.bf16.mxu0 %v1454_v24 }
  0xe6   : > { %803 = vmatpush1.bf16.xpose.msra.mxu1 %v1449_v28 }
  0xe7   : > { %978 = vmatprep.subr.bf16.mxu1 %v1457_v29 }
  0xe9   : > { %730 = vmatmul.mubr.bf16.vlgmr.msra.gmra.mxu0 %v1635_v44  ;;  %v1478_v44 = vld [vmem:[%s1561_s24 + $0x1b4] ss:$8 sps:$4 sm:$0xff]  }
  0xea   : > { %888 = vmatpush1.bf16.xpose.msra.mxu0 %v1452_v53  ;;  %911 = vmatprep.mubr.bf16.mxu0 %v836_v32 }
  0xeb   : > { %889 = vmatprep.subr.bf16.mxu0 %v1460_v31 }
  0xed   : > { %821 = vmatmul.mubr.bf16.vlgmr.msra.gmra.mxu1 %v1642_v51  ;;  %v1487_v51 = vld [vmem:[%s1561_s24 + $0x1e4] ss:$8 sps:$4 sm:$0xff]  }
  0xee   : > { %979 = vmatpush1.bf16.xpose.msra.mxu1 %v1455_v33  ;;  %1002 = vmatprep.mubr.bf16.mxu1 %v927_v35 }
  0xef   : > { %980 = vmatprep.subr.bf16.mxu1 %v1463_v34 }
  0xf2   : > { %890 = vmatpush1.bf16.xpose.msra.mxu0 %v1458_v36 }
  0xf3   : > { %891 = vmatprep.subr.bf16.mxu0 %v1466_v18 }
  0xf6   : > { %981 = vmatpush1.bf16.xpose.msra.mxu1 %v1461_v37 }
  0xf7   : > { %982 = vmatprep.subr.bf16.mxu1 %v1469_v38 }
  0xfa   : > { %892 = vmatpush1.bf16.xpose.msra.mxu0 %v1464_v39 }
  0xfb   : > { %893 = vmatprep.subr.bf16.mxu0 %v1472_v40 }
  0xfe   : > { %983 = vmatpush1.bf16.xpose.msra.mxu1 %v1467_v41 }
  0xff   : > { %984 = vmatprep.subr.bf16.mxu1 %v1475_v42 }
 0x102   : > { %894 = vmatpush1.bf16.xpose.msra.mxu0 %v1470_v43 }
 0x103   : > { %1069 = vmatprep.subr.bf16.mxu0 %v1478_v44 }
 0x106   : > { %985 = vmatpush1.bf16.xpose.msra.mxu1 %v1473_v45 }
 0x107   : > { %1160 = vmatprep.subr.bf16.mxu1 %v1481_v46 }
 0x109   : > { %912 = vmatmul.mubr.bf16.vlgmr.msra.gmra.mxu0 %v835_v30 }
 0x10a   : > { %1070 = vmatpush1.bf16.xpose.msra.mxu0 %v1476_v47  ;;  %1093 = vmatprep.mubr.bf16.mxu0 %v1018_v49 }
 0x10b   : > { %1071 = vmatprep.subr.bf16.mxu0 %v1484_v48 }
 0x10d   : > { %1003 = vmatmul.mubr.bf16.vlgmr.msra.gmra.mxu1 %v926_v12 }
 0x10e   : > { %1161 = vmatpush1.bf16.xpose.msra.mxu1 %v1479_v50  ;;  %1184 = vmatprep.mubr.bf16.mxu1 %v1109_v55 }
 0x10f   : > { %1162 = vmatprep.subr.bf16.mxu1 %v1487_v51 }
 0x112   : > { %1072 = vmatpush1.bf16.xpose.msra.mxu0 %v1482_v56 }
 0x113   : > { %1073 = vmatprep.subr.bf16.mxu0 %v1490_v57 }
 0x116   : > { %1163 = vmatpush1.bf16.xpose.msra.mxu1 %v1485_v58 }
 0x117   : > { %1164 = vmatprep.subr.bf16.mxu1 %v1493_v59 }
 0x11a   : > { %1074 = vmatpush1.bf16.xpose.msra.mxu0 %v1488_v60 }
 0x11b   : > { %1075 = vmatprep.subr.bf16.mxu0 %v1496_v61 }
 0x11e   : > { %1165 = vmatpush1.bf16.xpose.msra.mxu1 %v1491_v62 }
 0x11f   : > { %1166 = vmatprep.subr.bf16.mxu1 %v1499_v52 }
 0x122   : > { %1076 = vmatpush1.bf16.xpose.msra.mxu0 %v1494_v54 }
 0x126   : > { %1167 = vmatpush1.bf16.xpose.msra.mxu1 %v1497_v63 }
 0x129   : > { %1094 = vmatmul.mubr.bf16.vlgmr.msra.gmra.mxu0 %v1655_v0 }
 0x12d   : > { %1185 = vmatmul.mubr.bf16.vlgmr.msra.gmra.mxu1 %v1659_v2 }
 0x189   : > { %v549_v1 = vpop.f32.mrf.mxu0 }
 0x18a   : > { %v1192_v4 = vpack.c.bf16 %v549_v1, %v549_v1 }
 0x18b   : > { %v551_v5 = vpop.f32.mrf.mxu0 }
 0x18c   : > { %1201 = vst.msk [vmem:[%s1722_s23] sm:$0x3] %vm1200_vm0, %v1192_v4 }
 0x18d   : > { %v552_v6 = vpop.f32.mrf.mxu0  ;;  %v640_v7 = vpop.f32.mrf.mxu1 }
 0x18e   : > { %v1193_v0 = vpack.c.bf16 %v640_v7, %v640_v7 }
 0x18f   : > { %v553_v2 = vpop.f32.mrf.mxu0  ;;  %v642_v8 = vpop.f32.mrf.mxu1 }
 0x190   : > { %1202 = vst.msk [vmem:[%s1722_s23 + $0x2] sm:$0x3] %vm1200_vm0, %v1193_v0 }
 0x191   : > { %v643_v9 = vpop.f32.mrf.mxu1 }
 0x193   : > { %v644_v10 = vpop.f32.mrf.mxu1 }
 0x1a9   : > { %v731_v11 = vpop.f32.mrf.mxu0 }
 0x1aa   : > { %v1194_v13 = vpack.c.bf16 %v731_v11, %v731_v11 }
 0x1ab   : > { %v733_v14 = vpop.f32.mrf.mxu0 }
 0x1ac   : > { %1203 = vst.msk [vmem:[%s1722_s23 + $0x4] sm:$0x3] %vm1200_vm0, %v1194_v13 }
 0x1ad   : > { %v734_v15 = vpop.f32.mrf.mxu0  ;;  %v822_v16 = vpop.f32.mrf.mxu1 }
 0x1ae   : > { %v1195_v17 = vpack.c.bf16 %v822_v16, %v822_v16 }
 0x1af   : > { %v735_v19 = vpop.f32.mrf.mxu0  ;;  %v824_v20 = vpop.f32.mrf.mxu1 }
 0x1b0   : > { %1204 = vst.msk [vmem:[%s1722_s23 + $0x6] sm:$0x3] %vm1200_vm0, %v1195_v17 }
 0x1b1   : > { %v825_v21 = vpop.f32.mrf.mxu1 }
 0x1b3   : > { %v826_v22 = vpop.f32.mrf.mxu1 }
 0x1c9   : > { %v913_v23 = vpop.f32.mrf.mxu0 }
 0x1ca   : > { %v1196_v24 = vpack.c.bf16 %v913_v23, %v913_v23 }
 0x1cb   : > { %v915_v25 = vpop.f32.mrf.mxu0 }
 0x1cc   : > { %1205 = vst.msk [vmem:[%s1722_s23 + $0x8] sm:$0x3] %vm1200_vm0, %v1196_v24 }
 0x1cd   : > { %v916_v26 = vpop.f32.mrf.mxu0  ;;  %v1004_v27 = vpop.f32.mrf.mxu1 }
 0x1ce   : > { %v1197_v28 = vpack.c.bf16 %v1004_v27, %v1004_v27 }
 0x1cf   : > { %v917_v29 = vpop.f32.mrf.mxu0  ;;  %v1006_v3 = vpop.f32.mrf.mxu1 }
 0x1d0   : > { %1206 = vst.msk [vmem:[%s1722_s23 + $0xa] sm:$0x3] %vm1200_vm0, %v1197_v28 }
 0x1d1   : > { %v1007_v30 = vpop.f32.mrf.mxu1 }
 0x1d3   : > { %v1008_v53 = vpop.f32.mrf.mxu1 }
 0x1e9   : > { %v1095_v31 = vpop.f32.mrf.mxu0 }
 0x1ea   : > { %v1198_v32 = vpack.c.bf16 %v1095_v31, %v1095_v31 }
 0x1eb   : > { %v1097_v12 = vpop.f32.mrf.mxu0 }
 0x1ec   : > { %1207 = vst.msk [vmem:[%s1722_s23 + $0xc] sm:$0x3] %vm1200_vm0, %v1198_v32 }
 0x1ed   : > { %v1098_v33 = vpop.f32.mrf.mxu0  ;;  %v1186_v34 = vpop.f32.mrf.mxu1 }
 0x1ee   : > { %v1199_v35 = vpack.c.bf16 %v1186_v34, %v1186_v34 }
 0x1ef   : > { %v1099_v36 = vpop.f32.mrf.mxu0  ;;  %v1188_v18 = vpop.f32.mrf.mxu1 }
 0x1f0   : > { %1208 = vst.msk [vmem:[%s1722_s23 + $0xe] sm:$0x3] %vm1200_vm0, %v1199_v35 }
 0x1f1   : > { %v1189_v37 = vpop.f32.mrf.mxu1 }
 0x1f3   : > { %v1190_v38 = vpop.f32.mrf.mxu1 }
 0x1f4 PF: > { %s13_s12 = sadd.s32 1, %s1506_s12  }
 0x1f5   : > { %p10_p5 = scmp.ge.s32.totalorder %s13_s12, 4  }
 0x1f7   :  { %12 = sbr.rel (!%p10_p5) target bundleno = 1 (0x1), region = 66 }

</bundles_post_ra>
